<compile_context>
chip_gen: v5e
topology: v5e:2x2
jax: 0.10.0
libtpu: 0.0.40
codegen_flags: <defaults>
</compile_context>

<pallas_src>
import functools
import math

import numpy as np

import jax
import jax.numpy as jnp
from jax.experimental import pallas as pl
from jax.experimental.pallas import tpu as pltpu


def gaussian_kernel_1d(kernel_size: int, sigma: float):
    """1D factor of the module's 2D kernel.

    Matches the PyTorch module verbatim, including its
    exp(-((i - mean) / (2*sigma))**2) exponent convention:
    kernel2d = outer(k1d, k1d) / sum(outer(k1d, k1d)) == outer(w, w) with
    w = k1d / sum(k1d).  Returned as Python floats (baked at trace time).
    """
    mean = (kernel_size - 1) / 2.0
    k = [
        (1.0 / (sigma * math.sqrt(2.0 * math.pi)))
        * math.exp(-(((i - mean) / (2.0 * sigma)) ** 2))
        for i in range(kernel_size)
    ]
    s = sum(k)
    return [v / s for v in k]


def make_band_matrix(w1d, width: int, out_width_padded: int, out_width: int):
    """Banded (W, Wo_pad) numpy constant so that x_row @ band == 1D 'valid' conv.

    Columns >= out_width are zero (lane padding, sliced off by the caller).
    Built on the host so it is a folded constant, not traced device ops.
    """
    band = np.zeros((width, out_width_padded), np.float32)
    cols = np.arange(out_width)
    for dj, w in enumerate(w1d):
        band[cols + dj, cols] = np.float32(w)
    return band


def _smooth_kernel(x_ref, band_ref, o_ref, *, w1d):
    # x_ref: (B, H, W)   band_ref: (W, Wo_pad)   o_ref: (B, Ho, Wo_pad)
    B, H, W = x_ref.shape
    Wo_pad = band_ref.shape[1]
    Ho = o_ref.shape[1]
    K = len(w1d)

    x = x_ref[...]
    if x.dtype != band_ref.dtype:
        # bf16 inputs go to the MXU natively (band is bf16 then); anything else
        # is cast to f32 once per tile.
        x = x.astype(band_ref.dtype)

    # Horizontal pass (MXU): lane-dense banded matmul along the W (lane) axis.
    # Wo_pad is a multiple of 128 so both the matmul N-dim and the final store
    # are lane-dense (no masked partial stores).
    tmp = jnp.dot(
        x.reshape(B * H, W), band_ref[...], preferred_element_type=jnp.float32
    ).reshape(B, H, Wo_pad)

    # Vertical pass (VPU): K sublane-shifted MACs with baked f32 weights.
    # TODO(synk): if profiles show sublane-shift copies / vreg spills dominating
    #             for large B*H*Wo_pad, switch to pltpu.roll accumulation or a
    #             second banded matmul on the otherwise-idle MXU.
    acc = w1d[0] * tmp[:, 0:Ho, :]
    for di in range(1, K):
        acc = acc + w1d[di] * tmp[:, di : di + Ho, :]

    o_ref[...] = acc.astype(o_ref.dtype)


def _tpu_hw_info():
    """Best-effort (vmem_capacity_bytes, num_tensorcores) with safe fallbacks."""
    vmem_cap = 64 * 1024 * 1024  # v7x-sized conservative fallback (safe on all gens)
    num_cores = 1
    try:
        info = pltpu.get_tpu_info()
        vmem_cap = int(getattr(info, "vmem_capacity_bytes", vmem_cap))
        for name in ("num_cores", "num_tensorcores", "tensorcore_count"):
            v = getattr(info, name, None)
            if v:
                num_cores = int(v)
                break
    except Exception:
        pass
    try:
        num_cores = max(num_cores, int(getattr(jax.devices()[0], "num_cores", 1) or 1))
    except Exception:
        pass
    return vmem_cap, max(1, min(num_cores, 2))


def _choose_planes_per_step(nc, fixed_bytes, per_plane_bytes, budget, num_cores):
    fitting = [
        b
        for b in range(1, nc + 1)
        if nc % b == 0 and fixed_bytes + b * per_plane_bytes <= budget
    ]
    if not fitting:
        # TODO(synk): whole planes don't fit the VMEM budget -> needs H-halo tiling.
        return 1
    if num_cores > 1:
        # Keep the grid step count a multiple of the TensorCore count so neither
        # core idles (v7x megacore); pick the largest such tile.
        balanced = [b for b in fitting if (nc // b) % num_cores == 0]
        if balanced:
            return max(balanced)
    # Single-TC chips (v5e/v6e): biggest tile wins, a single grid step is fine.
    return max(fitting)


def gaussian_smoothing(
    x: jnp.ndarray,
    kernel_size: int,
    sigma: float,
    *,
    planes_per_step: int | None = None,
) -> jnp.ndarray:
    """Depthwise 'valid' 2D Gaussian conv of NCHW input (matches the PyTorch module)."""
    N, C, H, W = x.shape
    K = int(kernel_size)
    Ho, Wo = H - K + 1, W - K + 1
    if Ho <= 0 or Wo <= 0:
        raise ValueError("kernel_size larger than the spatial dims")
    NC = N * C
    Wo_pad = pl.cdiv(Wo, 128) * 128  # lane-dense output width

    band_dtype = jnp.bfloat16 if x.dtype == jnp.bfloat16 else jnp.float32
    w1d = gaussian_kernel_1d(K, sigma)
    band = jnp.asarray(make_band_matrix(w1d, W, Wo_pad, Wo), dtype=band_dtype)

    # --- per-chip VMEM accounting & tile choice --------------------------------
    vmem_cap, num_cores = _tpu_hw_info()
    isz = jnp.dtype(x.dtype).itemsize
    bsz = jnp.dtype(band_dtype).itemsize
    fixed_bytes = 2 * W * Wo_pad * bsz  # band (default double-buffered, constant index_map)
    per_plane_bytes = (
        2 * H * W * isz                # double-buffered input block
        + 2 * Ho * Wo_pad * isz        # double-buffered output block
        + 4 * (H * Wo_pad + Ho * Wo_pad)  # f32 tmp + acc intermediates
    )
    # ~0.7 of physical VMEM: ~45 MiB on v7x (64 MiB), ~90 MiB on v5e/v6e (128 MiB).
    budget = int(0.7 * vmem_cap)

    if planes_per_step is None:
        planes_per_step = _choose_planes_per_step(
            NC, fixed_bytes, per_plane_bytes, budget, num_cores
        )
    B = planes_per_step
    grid = (NC // B,)

    accounted = fixed_bytes + B * per_plane_bytes
    vmem_limit = max(
        32 * 1024 * 1024,
        min(int(0.95 * vmem_cap), 2 * accounted + (4 << 20)),
    )

    x_flat = x.reshape(NC, H, W)
    kernel = functools.partial(_smooth_kernel, w1d=tuple(float(v) for v in w1d))

    out_flat = pl.pallas_call(
        kernel,
        out_shape=jax.ShapeDtypeStruct((NC, Ho, Wo_pad), x.dtype),
        grid_spec=pltpu.PrefetchScalarGridSpec(
            num_scalar_prefetch=0,
            grid=grid,
            in_specs=[
                pl.BlockSpec((B, H, W), lambda i: (i, 0, 0)),   # B planes / step
                pl.BlockSpec((W, Wo_pad), lambda i: (0, 0)),    # resident band matrix
            ],
            out_specs=pl.BlockSpec((B, Ho, Wo_pad), lambda i: (i, 0, 0)),
        ),
        compiler_params=pltpu.CompilerParams(
            dimension_semantics=("parallel",),
            vmem_limit_bytes=vmem_limit,
        ),
    )(x_flat, band)

    # Drop the lane padding on the host (negligible extra HBM traffic for small Wo,
    # ~0 for large Wo; buys unmasked lane-dense stores inside the kernel).
    return out_flat[:, :, :Wo].reshape(N, C, Ho, Wo)


def _reference(x, kernel_size, sigma):
    """Pure-JAX reference: depthwise valid conv with the module's 2D kernel,
    built the same (non-separable) way the PyTorch module builds it, so the
    separable factorization used by the Pallas kernel is checked independently."""
    N, C, H, W = x.shape
    K = kernel_size
    mean = (K - 1) / 2.0
    g = np.array(
        [
            (1.0 / (sigma * math.sqrt(2.0 * math.pi)))
            * math.exp(-(((i - mean) / (2.0 * sigma)) ** 2))
            for i in range(K)
        ],
        dtype=np.float64,
    )
    k2d = np.outer(g, g)
    k2d = (k2d / k2d.sum()).astype(np.float32)
    w = jnp.broadcast_to(jnp.asarray(k2d)[None, None], (C, 1, K, K))
    return jax.lax.conv_general_dilated(
        x,
        w,
        window_strides=(1, 1),
        padding="VALID",
        dimension_numbers=("NCHW", "OIHW", "NCHW"),
        feature_group_count=C,
    )


if __name__ == "__main__":
    # Module config: channels=4, kernel_size=5, sigma=1, dim=2
    channels, kernel_size, sigma = 4, 5, 1.0
    N, H, W = 2, 16, 16

    key = jax.random.PRNGKey(0)
    x = jax.random.normal(key, (N, channels, H, W), dtype=jnp.float32)

    out = gaussian_smoothing(x, kernel_size, sigma)
    out = jax.block_until_ready(out)

    ref = _reference(x, kernel_size, sigma)
    assert out.shape == (N, channels, H - kernel_size + 1, W - kernel_size + 1)
    assert jnp.allclose(out, ref, atol=1e-5, rtol=1e-5)

    print("KERNEL_OK")
</pallas_src>

<mosaic_0001>
module attributes {stable_mosaic.version = 11 : i64} {
  func.func @_smooth_kernel(%arg0: i32, %arg1: memref<8x16x16xf32, #tpu.memory_space<vmem>>, %arg2: memref<16x128xf32, #tpu.memory_space<vmem>>, %arg3: memref<8x12x128xf32, #tpu.memory_space<vmem>>) attributes {dimension_semantics = [#tpu.dimension_semantics<parallel>], iteration_bounds = array<i64: 1>, scalar_prefetch = 0 : i64, scratch_operands = 0 : i64, tpu.core_type = #tpu.core_type<tc>, window_params = [{transform_indices = @transform_0, window_bounds = array<i64: 8, 16, 16>}, {pipeline_mode = #tpu.pipeline_mode<synchronous>, transform_indices = @transform_1, window_bounds = array<i64: 16, 128>}, {transform_indices = @transform_2, window_bounds = array<i64: 8, 12, 128>}]} {
    %c0 = arith.constant 0 : index
    %c0_0 = arith.constant 0 : index
    %c0_1 = arith.constant 0 : index
    %0 = vector.load %arg1[%c0, %c0_0, %c0_1] : memref<8x16x16xf32, #tpu.memory_space<vmem>>, vector<8x16x16xf32>
    %1 = vector.shape_cast %0 : vector<8x16x16xf32> to vector<128x16xf32>
    %c0_2 = arith.constant 0 : index
    %c0_3 = arith.constant 0 : index
    %2 = vector.load %arg2[%c0_2, %c0_3] : memref<16x128xf32, #tpu.memory_space<vmem>>, vector<16x128xf32>
    %cst = arith.constant dense<0.000000e+00> : vector<128x128xf32>
    %3 = tpu.matmul %1, %2, %cst {dimension_numbers = #tpu.dot_dimension_numbers<[1], [0], [0], [1], [0, 0, 1, 1], [], []>} : vector<128x16xf32>, vector<16x128xf32>, vector<128x128xf32> -> vector<128x128xf32>
    %4 = vector.shape_cast %3 : vector<128x128xf32> to vector<8x16x128xf32>
    %5 = vector.extract_strided_slice %4 {offsets = [0, 0, 0], sizes = [8, 12, 128], strides = [1, 1, 1]} : vector<8x16x128xf32> to vector<8x12x128xf32>
    %cst_4 = arith.constant 0.111703366 : f32
    %6 = vector.broadcast %cst_4 : f32 to vector<8x12x128xf32>
    %7 = arith.mulf %6, %5 : vector<8x12x128xf32>
    %8 = vector.extract_strided_slice %4 {offsets = [0, 1, 0], sizes = [8, 12, 128], strides = [1, 1, 1]} : vector<8x16x128xf32> to vector<8x12x128xf32>
    %cst_5 = arith.constant 0.236476019 : f32
    %9 = vector.broadcast %cst_5 : f32 to vector<8x12x128xf32>
    %10 = arith.mulf %9, %8 : vector<8x12x128xf32>
    %11 = arith.addf %7, %10 : vector<8x12x128xf32>
    %12 = vector.extract_strided_slice %4 {offsets = [0, 2, 0], sizes = [8, 12, 128], strides = [1, 1, 1]} : vector<8x16x128xf32> to vector<8x12x128xf32>
    %cst_6 = arith.constant 0.30364123 : f32
    %13 = vector.broadcast %cst_6 : f32 to vector<8x12x128xf32>
    %14 = arith.mulf %13, %12 : vector<8x12x128xf32>
    %15 = arith.addf %11, %14 : vector<8x12x128xf32>
    %16 = vector.extract_strided_slice %4 {offsets = [0, 3, 0], sizes = [8, 12, 128], strides = [1, 1, 1]} : vector<8x16x128xf32> to vector<8x12x128xf32>
    %cst_7 = arith.constant 0.236476019 : f32
    %17 = vector.broadcast %cst_7 : f32 to vector<8x12x128xf32>
    %18 = arith.mulf %17, %16 : vector<8x12x128xf32>
    %19 = arith.addf %15, %18 : vector<8x12x128xf32>
    %20 = vector.extract_strided_slice %4 {offsets = [0, 4, 0], sizes = [8, 12, 128], strides = [1, 1, 1]} : vector<8x16x128xf32> to vector<8x12x128xf32>
    %cst_8 = arith.constant 0.111703366 : f32
    %21 = vector.broadcast %cst_8 : f32 to vector<8x12x128xf32>
    %22 = arith.mulf %21, %20 : vector<8x12x128xf32>
    %23 = arith.addf %19, %22 : vector<8x12x128xf32>
    %c0_9 = arith.constant 0 : index
    %c0_10 = arith.constant 0 : index
    %c0_11 = arith.constant 0 : index
    %24 = vector.load %arg3[%c0_9, %c0_10, %c0_11] : memref<8x12x128xf32, #tpu.memory_space<vmem>>, vector<8x12x128xf32>
    tpu.vector_store %arg3[%c0_9, %c0_10, %c0_11], %23 {strides = array<i32>} : memref<8x12x128xf32, #tpu.memory_space<vmem>>, vector<8x12x128xf32>,
    return
  }
  func.func @transform_0(%arg0: i32) -> (i32, i32, i32) {
    %c0_i32 = arith.constant 0 : i32
    %c0_i32_0 = arith.constant 0 : i32
    %c0_i32_1 = arith.constant 0 : i32
    return %arg0, %c0_i32, %c0_i32_0 : i32, i32, i32
  }
  func.func @transform_1(%arg0: i32) -> (i32, i32) {
    %c0_i32 = arith.constant 0 : i32
    %c0_i32_0 = arith.constant 0 : i32
    %c0_i32_1 = arith.constant 0 : i32
    return %c0_i32, %c0_i32_0 : i32, i32
  }
  func.func @transform_2(%arg0: i32) -> (i32, i32, i32) {
    %c0_i32 = arith.constant 0 : i32
    %c0_i32_0 = arith.constant 0 : i32
    %c0_i32_1 = arith.constant 0 : i32
    return %arg0, %c0_i32, %c0_i32_0 : i32, i32, i32
  }
}

</mosaic_0001>

<bundles_post_ra>
// kernel: tpu_custom_call.1
= control target key start
LH: loop header
LB: loop body
LE: loop exit
PB: predicated region body
PF: predicated region fallthrough
CT: control target
= control target key end

     0   :  { %7 = vsyncpa [#allocation3], 0  ;;  %s782_s0 = inlined_call_operand.hbm [shape: f32[8,16,16], index: 0, kind: input, shape index: {}]   ;;  %s783_s1 = inlined_call_operand.hbm [shape: f32[16,128], index: 1, kind: input, shape index: {}]   ;;  %s784_s2 = inlined_call_operand.vmem [shape: f32[8,12,128], index: 2, kind: output, shape index: {}]  }
   0x1   :  { %s13_s11 = sshll.u32 %s782_s0, 4  ;;  %s14_s11 = int_to_ptr.hbm [resolvable:$true] %s13_s11 }
   0x2   :  { %8 = vsyncpa [#allocation5], 0  ;;  %s599_s12 = smov [#allocation2]   ;;  %s26_s16 = sshll.u32 %s783_s1, 4  ;;  %s27_s16 = int_to_ptr.hbm [resolvable:$true] %s26_s16 }
   0x3   :  { %s15_s13 = sshll.u32 %s599_s12, 4  ;;  %s600_s17 = smov 128   ;;  %s16_s13 = int_to_ptr.vmem [resolvable:$true] %s15_s13 }
   0x4   :  { %s601_s18 = smov 8   ;;  %s602_s19 = smov [#allocation4]  }
   0x5   :  { %21 = dma.hbm_to_vmem [thread:$0]  %s14_s11, 2048, %s16_s13, [#allocation3], %s600_s17, %s600_s17, %s601_s18  }
   0x6   :  { %s28_s20 = sshll.u32 %s602_s19, 4  ;;  %s29_s20 = int_to_ptr.vmem [resolvable:$true] %s28_s20 }
   0x7   :  { %34 = dma.hbm_to_vmem [thread:$0]  %s27_s16, 256, %s29_s20, [#allocation5], %s600_s17, %s600_s17, %s601_s18  }
   0x8   :  { %595 = dma.done.wait [#allocation3], 2048  }
   0x9   :  { %596 = vsyncadd [#allocation3], 4294965248 }
   0xa   :  { %597 = dma.done.wait [#allocation5], 256  }
   0xb   :  { %598 = vsyncadd [#allocation5], 4294967040  ;;  %v60_v0 = vld [vmem:[#allocation4 + $0x8] sm:$0xff]  ;;  %v59_v1 = vld [vmem:[#allocation4] sm:$0xff]  ;;  %vm61_vm0 = vcmask 130048   ;;  %vm223_vm1 = vcmask 1046528  }
   0xc   :  { %124 = vmatpush.msra.mxu0 %v60_v0  ;;  %537 = vmatpush.msra.mxu1 %v60_v0  ;;  %v43_v2 = vld [vmem:[#allocation2] sm:$0xff]  ;;  %v44_v6 = vld [vmem:[#allocation2 + $0x8] sm:$0xff]  ;;  %v45_v10 = vld [vmem:[#allocation2 + $0x10] sm:$0xff]  ;;  %vm312_vm2 = vcmask 1045504   ;;  %vm369_vm3 = vcmask 1044480   ;;  %vm442_vm4 = vcmask 1043456  }
   0xd   :  { %538 = vmatpush.msra.mxu2 %v60_v0  ;;  %539 = vmatpush.msra.mxu3 %v60_v0  ;;  %v47_v3 = vld [vmem:[#allocation2 + $0x20] sm:$0xff]  ;;  %v48_v7 = vld [vmem:[#allocation2 + $0x28] sm:$0xff]  ;;  %v49_v11 = vld [vmem:[#allocation2 + $0x30] sm:$0xff] }
   0xe   :  { %125 = vmatpush.msra.mxu0 %v59_v1  ;;  %540 = vmatpush.msra.mxu1 %v59_v1  ;;  %v51_v4 = vld [vmem:[#allocation2 + $0x40] sm:$0xff]  ;;  %v52_v8 = vld [vmem:[#allocation2 + $0x48] sm:$0xff]  ;;  %v53_v12 = vld [vmem:[#allocation2 + $0x50] sm:$0xff] }
   0xf   :  { %v55_v5 = vld [vmem:[#allocation2 + $0x60] sm:$0xff]  ;;  %541 = vmatpush.msra.mxu2 %v59_v1  ;;  %542 = vmatpush.msra.mxu3 %v59_v1  ;;  %v56_v9 = vld [vmem:[#allocation2 + $0x68] sm:$0xff]  ;;  %v57_v13 = vld [vmem:[#allocation2 + $0x70] sm:$0xff] }
  0x10   :  { %521 = vmatmul.msk.f32.vlgmr.msra.gmra.mxu0 %vm61_vm0, %v43_v2  ;;  %525 = vmatmul.msk.f32.vlgmr.msra.gmra.mxu1 %vm61_vm0, %v47_v3  ;;  %v46_v14 = vld [vmem:[#allocation2 + $0x18] sm:$0xff] }
  0x11   :  { %529 = vmatmul.msk.f32.vlgmr.msra.gmra.mxu2 %vm61_vm0, %v51_v4  ;;  %533 = vmatmul.msk.f32.vlgmr.msra.gmra.mxu3 %vm61_vm0, %v55_v5  ;;  %v50_v15 = vld [vmem:[#allocation2 + $0x38] sm:$0xff] }
  0x12   :  { %v54_v16 = vld [vmem:[#allocation2 + $0x58] sm:$0xff] }
  0x13   :  { %v58_v17 = vld [vmem:[#allocation2 + $0x78] sm:$0xff] }
  0x18   :  { %522 = vmatmul.msk.f32.gmra.mxu0 %vm61_vm0, %v44_v6  ;;  %526 = vmatmul.msk.f32.gmra.mxu1 %vm61_vm0, %v48_v7 }
  0x19   :  { %530 = vmatmul.msk.f32.gmra.mxu2 %vm61_vm0, %v52_v8  ;;  %534 = vmatmul.msk.f32.gmra.mxu3 %vm61_vm0, %v56_v9 }
  0x20   :  { %523 = vmatmul.msk.f32.gmra.mxu0 %vm61_vm0, %v45_v10  ;;  %527 = vmatmul.msk.f32.gmra.mxu1 %vm61_vm0, %v49_v11 }
  0x21   :  { %531 = vmatmul.msk.f32.gmra.mxu2 %vm61_vm0, %v53_v12  ;;  %535 = vmatmul.msk.f32.gmra.mxu3 %vm61_vm0, %v57_v13 }
  0x28   :  { %524 = vmatmul.msk.f32.gmra.mxu0 %vm61_vm0, %v46_v14  ;;  %528 = vmatmul.msk.f32.gmra.mxu1 %vm61_vm0, %v50_v15 }
  0x29   :  { %532 = vmatmul.msk.f32.gmra.mxu2 %vm61_vm0, %v54_v16  ;;  %536 = vmatmul.msk.f32.gmra.mxu3 %vm61_vm0, %v58_v17 }
  0x8d   :  { %v127_v18 = vpop.f32.mrf.mxu0  ;;  %v139_v19 = vpop.f32.mrf.mxu1 }
  0x8e   :  { %v640_v20 = vmul.f32 0.111703366, %v127_v18  ;;  %v191_v21 = vmul.f32 0.23647602, %v127_v18  ;;  %v280_v22 = vmul.f32 0.30364123, %v127_v18 }
  0x8f   :  { %v642_v23 = vmul.f32 0.111703366, %v139_v19  ;;  %v644_v24 = vmul.f32 0.23647602, %v139_v19  ;;  %v284_v25 = vmul.f32 0.30364123, %v139_v19 }
  0x90   :  { %v224_v27 = vrot.slane %v191_v21, 1  ;;  %v313_v28 = vrot.slane %v280_v22, 2  ;;  %v370_v29 = vrot.slane %v191_v21, 3  ;;  %v443_v30 = vrot.slane %v640_v20, 4 }
  0x91   :  { %v230_v32 = vrot.slane %v644_v24, 1  ;;  %v319_v33 = vrot.slane %v284_v25, 2  ;;  %v376_v34 = vrot.slane %v644_v24, 3  ;;  %v449_v35 = vrot.slane %v642_v23, 4 }
  0x94   :  { %v151_v26 = vpop.f32.mrf.mxu2  ;;  %v163_v31 = vpop.f32.mrf.mxu3 }
  0x95   :  { %v130_v36 = vpop.f32.mrf.mxu0  ;;  %v650_v37 = vmul.f32 0.111703366, %v151_v26  ;;  %v652_v38 = vmul.f32 0.23647602, %v151_v26  ;;  %v654_v39 = vmul.f32 0.30364123, %v151_v26  ;;  %v142_v40 = vpop.f32.mrf.mxu1 }
  0x96   :  { %v656_v41 = vmul.f32 0.111703366, %v163_v31  ;;  %v658_v42 = vmul.f32 0.23647602, %v163_v31  ;;  %v660_v43 = vmul.f32 0.30364123, %v163_v31 }
  0x97   :  { %v176_v44 = vmul.f32 0.111703366, %v130_v36  ;;  %v192_v45 = vmul.f32 0.23647602, %v130_v36  ;;  %v281_v46 = vmul.f32 0.30364123, %v130_v36 }
  0x98   :  { %v180_v47 = vmul.f32 0.111703366, %v142_v40  ;;  %v196_v48 = vmul.f32 0.23647602, %v142_v40  ;;  %v285_v49 = vmul.f32 0.30364123, %v142_v40 }
  0x99   :  { %v236_v50 = vrot.slane %v652_v38, 1  ;;  %v225_v51 = vrot.slane %v192_v45, 1  ;;  %v314_v52 = vrot.slane %v281_v46, 2  ;;  %v371_v53 = vrot.slane %v192_v45, 3 }
  0x9a   :  { %v325_v54 = vrot.slane %v654_v39, 2  ;;  %v382_v55 = vrot.slane %v652_v38, 3  ;;  %v231_v56 = vrot.slane %v196_v48, 1  ;;  %v320_v57 = vrot.slane %v285_v49, 2 }
  0x9b   :  { %v226_v58 = vsel %vm223_vm1, %v224_v27, %v225_v51  ;;  %v265_v59 = vadd.f32 %v225_v51, %v176_v44  ;;  %v444_v60 = vrot.slane %v176_v44, 4  ;;  %v377_v61 = vrot.slane %v196_v48, 3 }
  0x9c   :  { %v154_v62 = vpop.f32.mrf.mxu2  ;;  %v264_v63 = vadd.f32 %v226_v58, %v640_v20  ;;  %v232_v0 = vsel %vm223_vm1, %v230_v32, %v231_v56  ;;  %v269_v1 = vadd.f32 %v231_v56, %v180_v47  ;;  %v450_v2 = vrot.slane %v180_v47, 4 }
  0x9d   :  { %v315_v3 = vsel %vm312_vm2, %v313_v28, %v314_v52  ;;  %v354_v4 = vadd.f32 %v314_v52, %v265_v59  ;;  %v372_v5 = vsel %vm369_vm3, %v370_v29, %v371_v53  ;;  %v268_v6 = vadd.f32 %v232_v0, %v642_v23  ;;  %v166_v23 = vpop.f32.mrf.mxu3  ;;  %v133_v44 = vpop.f32.mrf.mxu0 }
  0x9e   :  { %v353_v7 = vadd.f32 %v315_v3, %v264_v63  ;;  %v321_v8 = vsel %vm312_vm2, %v319_v33, %v320_v57  ;;  %v358_v9 = vadd.f32 %v320_v57, %v269_v1  ;;  %v184_v10 = vmul.f32 0.111703366, %v154_v62  ;;  %v145_v48 = vpop.f32.mrf.mxu1 }
  0x9f   :  { %v411_v11 = vadd.f32 %v371_v53, %v354_v4  ;;  %v357_v12 = vadd.f32 %v321_v8, %v268_v6  ;;  %v200_v13 = vmul.f32 0.23647602, %v154_v62  ;;  %v289_v14 = vmul.f32 0.30364123, %v154_v62 }
  0xa0   :  { %v410_v15 = vadd.f32 %v372_v5, %v353_v7  ;;  %v445_v16 = vsel %vm442_vm4, %v443_v30, %v444_v60  ;;  %v378_v17 = vsel %vm369_vm3, %v376_v34, %v377_v61  ;;  %v415_v18 = vadd.f32 %v377_v61, %v358_v9 }
  0xa1   :  { %v484_v19 = vadd.f32 %v444_v60, %v411_v11  ;;  %v414_v20 = vadd.f32 %v378_v17, %v357_v12  ;;  %v237_v21 = vrot.slane %v200_v13, 1  ;;  %v326_v22 = vrot.slane %v289_v14, 2 }
  0xa2   :  { %v483_v24 = vadd.f32 %v445_v16, %v410_v15  ;;  %v451_v25 = vsel %vm442_vm4, %v449_v35, %v450_v2  ;;  %v488_v26 = vadd.f32 %v450_v2, %v415_v18  ;;  %v456_v27 = vrot.slane %v184_v10, 4 }
  0xa3   :  { %500 = vst [vmem:[%s784_s2 + $0x8] sm:$0xf] %v484_v19  ;;  %v487_v28 = vadd.f32 %v451_v25, %v414_v20  ;;  %v238_v29 = vsel %vm223_vm1, %v236_v50, %v237_v21  ;;  %v273_v30 = vadd.f32 %v237_v21, %v184_v10  ;;  %v383_v31 = vrot.slane %v200_v13, 3 }
  0xa4   :  { %v455_v32 = vrot.slane %v650_v37, 4  ;;  %499 = vst [vmem:[%s784_s2] sm:$0xff] %v483_v24  ;;  %v272_v33 = vadd.f32 %v238_v29, %v650_v37  ;;  %v204_v34 = vmul.f32 0.23647602, %v166_v23  ;;  %v293_v35 = vmul.f32 0.30364123, %v166_v23  ;;  %v157_v4 = vpop.f32.mrf.mxu2 }
  0xa5   :  { %v242_v36 = vrot.slane %v658_v42, 1  ;;  %503 = vst [vmem:[%s784_s2 + $0x20] sm:$0xff] %v487_v28  ;;  %v327_v38 = vsel %vm312_vm2, %v325_v54, %v326_v22  ;;  %v362_v39 = vadd.f32 %v326_v22, %v273_v30  ;;  %v188_v40 = vmul.f32 0.111703366, %v166_v23  ;;  %v714_v12 = vpop.f32.mrf.mxu3  ;;  %v136_v17 = vpop.f32.mrf.mxu0 }
  0xa6   :  { %v331_v45 = vrot.slane %v660_v43, 2  ;;  %504 = vst [vmem:[%s784_s2 + $0x28] sm:$0xf] %v488_v26  ;;  %v361_v37 = vadd.f32 %v327_v38, %v272_v33  ;;  %v243_v46 = vrot.slane %v204_v34, 1  ;;  %v332_v47 = vrot.slane %v293_v35, 2  ;;  %v148_v20 = vpop.f32.mrf.mxu1 }
  0xa7   :  { %v388_v49 = vrot.slane %v658_v42, 3  ;;  %v384_v50 = vsel %vm369_vm3, %v382_v55, %v383_v31  ;;  %v419_v51 = vadd.f32 %v383_v31, %v362_v39  ;;  %v457_v52 = vsel %vm442_vm4, %v455_v32, %v456_v27 }
  0xa8   :  { %v418_v53 = vadd.f32 %v384_v50, %v361_v37  ;;  %v244_v54 = vsel %vm223_vm1, %v242_v36, %v243_v46  ;;  %v277_v56 = vadd.f32 %v243_v46, %v188_v40  ;;  %v389_v43 = vrot.slane %v204_v34, 3 }
  0xa9   :  { %v492_v57 = vadd.f32 %v456_v27, %v419_v51  ;;  %v276_v58 = vadd.f32 %v244_v54, %v656_v41  ;;  %v462_v59 = vrot.slane %v188_v40, 4  ;;  %v698_v60 = vmul.f32 0.23647602, %v133_v44 }
  0xaa   :  { %v491_v61 = vadd.f32 %v457_v52, %v418_v53  ;;  %v333_v62 = vsel %vm312_vm2, %v331_v45, %v332_v47  ;;  %v366_v42 = vadd.f32 %v332_v47, %v277_v56  ;;  %v282_v63 = vmul.f32 0.30364123, %v133_v44 }
  0xab   :  { %v461_v55 = vrot.slane %v656_v41, 4  ;;  %508 = vst [vmem:[%s784_s2 + $0x48] sm:$0xf] %v492_v57  ;;  %v365_v0 = vadd.f32 %v333_v62, %v276_v58  ;;  %v177_v1 = vmul.f32 0.111703366, %v133_v44  ;;  %v390_v2 = vsel %vm369_vm3, %v388_v49, %v389_v43 }
  0xac   :  { %507 = vst [vmem:[%s784_s2 + $0x40] sm:$0xff] %v491_v61  ;;  %v423_v3 = vadd.f32 %v389_v43, %v366_v42  ;;  %v710_v7 = vmul.f32 0.111703366, %v145_v48  ;;  %v197_v41 = vmul.f32 0.23647602, %v145_v48  ;;  %v227_v9 = vrot.slane %v698_v60, 1  ;;  %v160_v47 = vpop.f32.mrf.mxu2 }
  0xad   :  { %v422_v5 = vadd.f32 %v390_v2, %v365_v0  ;;  %v463_v6 = vsel %vm442_vm4, %v461_v55, %v462_v59  ;;  %v316_v10 = vrot.slane %v282_v63, 2  ;;  %v373_v11 = vrot.slane %v698_v60, 3 }
  0xae   :  { %v496_v8 = vadd.f32 %v462_v59, %v423_v3  ;;  %v446_v14 = vrot.slane %v177_v1, 4  ;;  %v286_v15 = vmul.f32 0.30364123, %v145_v48  ;;  %v716_v16 = vmul.f32 0.23647602, %v157_v4 }
  0xaf   :  { %v495_v13 = vadd.f32 %v463_v6, %v422_v5  ;;  %v721_v18 = vmul.f32 0.111703366, %v157_v4  ;;  %v723_v19 = vmul.f32 0.30364123, %v157_v4  ;;  %v233_v21 = vrot.slane %v197_v41, 1 }
  0xb0   :  { %512 = vst [vmem:[%s784_s2 + $0x68] sm:$0xf] %v496_v8  ;;  %v379_v22 = vrot.slane %v197_v41, 3  ;;  %v452_v23 = vrot.slane %v710_v7, 4  ;;  %v730_v24 = vmul.f32 0.23647602, %v714_v12 }
  0xb1   :  { %511 = vst [vmem:[%s784_s2 + $0x60] sm:$0xff] %v495_v13  ;;  %v178_v25 = vmul.f32 0.111703366, %v136_v17  ;;  %v194_v26 = vmul.f32 0.23647602, %v136_v17  ;;  %v322_v28 = vrot.slane %v286_v15, 2 }
  0xb2   :  { %v283_v27 = vmul.f32 0.30364123, %v136_v17  ;;  %v239_v29 = vrot.slane %v716_v16, 1  ;;  %v182_v30 = vmul.f32 0.111703366, %v148_v20  ;;  %v328_v32 = vrot.slane %v723_v19, 2 }
  0xb3   :  { %v198_v31 = vmul.f32 0.23647602, %v148_v20  ;;  %v228_v33 = vrot.slane %v194_v26, 1  ;;  %v374_v35 = vrot.slane %v194_v26, 3  ;;  %v447_v36 = vrot.slane %v178_v25, 4 }
  0xb4   :  { %v317_v34 = vrot.slane %v283_v27, 2  ;;  %v287_v39 = vmul.f32 0.30364123, %v148_v20  ;;  %v385_v44 = vrot.slane %v716_v16, 3  ;;  %v453_v46 = vrot.slane %v182_v30, 4 }
  0xb5   :  { %v234_v38 = vrot.slane %v198_v31, 1  ;;  %v380_v40 = vrot.slane %v198_v31, 3  ;;  %v229_v45 = vsel %vm223_vm1, %v227_v9, %v228_v33  ;;  %v267_v37 = vadd.f32 %v228_v33, %v178_v25  ;;  %v172_v9 = vpop.f32.mrf.mxu3 }
  0xb6   :  { %v266_v48 = vadd.f32 %v229_v45, %v177_v1  ;;  %v318_v49 = vsel %vm312_vm2, %v316_v10, %v317_v34  ;;  %v375_v53 = vsel %vm369_vm3, %v373_v11, %v374_v35  ;;  %v323_v56 = vrot.slane %v287_v39, 2 }
  0xb7   :  { %v235_v50 = vsel %vm223_vm1, %v233_v21, %v234_v38  ;;  %v271_v51 = vadd.f32 %v234_v38, %v182_v30  ;;  %v356_v52 = vadd.f32 %v317_v34, %v267_v37  ;;  %v448_v57 = vsel %vm442_vm4, %v446_v14, %v447_v36 }
  0xb8   :  { %v270_v54 = vadd.f32 %v235_v50, %v710_v7  ;;  %v355_v43 = vadd.f32 %v318_v49, %v266_v48  ;;  %v381_v58 = vsel %vm369_vm3, %v379_v22, %v380_v40  ;;  %v202_v59 = vmul.f32 0.23647602, %v160_v47 }
  0xb9   :  { %v413_v60 = vadd.f32 %v374_v35, %v356_v52  ;;  %v324_v61 = vsel %vm312_vm2, %v322_v28, %v323_v56  ;;  %v360_v62 = vadd.f32 %v323_v56, %v271_v51  ;;  %v291_v42 = vmul.f32 0.30364123, %v160_v47 }
  0xba   :  { %v412_v63 = vadd.f32 %v375_v53, %v355_v43  ;;  %v359_v55 = vadd.f32 %v324_v61, %v270_v54  ;;  %v186_v0 = vmul.f32 0.111703366, %v160_v47  ;;  %v240_v1 = vrot.slane %v202_v59, 1 }
  0xbb   :  { %v486_v2 = vadd.f32 %v447_v36, %v413_v60  ;;  %v417_v3 = vadd.f32 %v380_v40, %v360_v62  ;;  %v329_v4 = vrot.slane %v291_v42, 2  ;;  %v386_v5 = vrot.slane %v202_v59, 3 }
  0xbc   :  { %v485_v6 = vadd.f32 %v448_v57, %v412_v63  ;;  %v416_v7 = vadd.f32 %v381_v58, %v359_v55  ;;  %v241_v41 = vsel %vm223_vm1, %v239_v29, %v240_v1  ;;  %v275_v8 = vadd.f32 %v240_v1, %v186_v0 }
  0xbd   :  { %v294_v10 = vmul.f32 0.30364123, %v714_v12  ;;  %502 = vst [vmem:[%s784_s2 + $0x18] sm:$0xf] %v486_v2  ;;  %v454_v11 = vsel %vm442_vm4, %v452_v23, %v453_v46  ;;  %v490_v13 = vadd.f32 %v453_v46, %v417_v3  ;;  %v274_v14 = vadd.f32 %v241_v41, %v721_v18 }
  0xbe   :  { %501 = vst [vmem:[%s784_s2 + $0x10] sm:$0xff] %v485_v6  ;;  %v489_v15 = vadd.f32 %v454_v11, %v416_v7  ;;  %v330_v16 = vsel %vm312_vm2, %v328_v32, %v329_v4  ;;  %v364_v17 = vadd.f32 %v329_v4, %v275_v8  ;;  %v459_v19 = vrot.slane %v186_v0, 4 }
  0xbf   :  { %506 = vst [vmem:[%s784_s2 + $0x38] sm:$0xf] %v490_v13  ;;  %v363_v20 = vadd.f32 %v330_v16, %v274_v14  ;;  %v206_v21 = vmul.f32 0.23647602, %v172_v9  ;;  %v295_v22 = vmul.f32 0.30364123, %v172_v9  ;;  %v387_v26 = vsel %vm369_vm3, %v385_v44, %v386_v5 }
  0xc0   :  { %v458_v23 = vrot.slane %v721_v18, 4  ;;  %v245_v25 = vrot.slane %v730_v24, 1  ;;  %505 = vst [vmem:[%s784_s2 + $0x30] sm:$0xff] %v489_v15  ;;  %v421_v27 = vadd.f32 %v386_v5, %v364_v17  ;;  %v190_v29 = vmul.f32 0.111703366, %v172_v9 }
  0xc1   :  { %v420_v28 = vadd.f32 %v387_v26, %v363_v20  ;;  %v246_v30 = vrot.slane %v206_v21, 1  ;;  %v335_v31 = vrot.slane %v295_v22, 2  ;;  %v189_v32 = vmul.f32 0.111703366, %v714_v12 }
  0xc2   :  { %v334_v33 = vrot.slane %v294_v10, 2  ;;  %v460_v34 = vsel %vm442_vm4, %v458_v23, %v459_v19  ;;  %v494_v35 = vadd.f32 %v459_v19, %v421_v27  ;;  %v392_v39 = vrot.slane %v206_v21, 3 }
  0xc3   :  { %v493_v18 = vadd.f32 %v460_v34, %v420_v28  ;;  %v247_v36 = vsel %vm223_vm1, %v245_v25, %v246_v30  ;;  %v279_v38 = vadd.f32 %v246_v30, %v190_v29  ;;  %v391_v44 = vrot.slane %v730_v24, 3 }
  0xc4   :  { %510 = vst [vmem:[%s784_s2 + $0x58] sm:$0xf] %v494_v35  ;;  %v278_v40 = vadd.f32 %v247_v36, %v189_v32  ;;  %v336_v12 = vsel %vm312_vm2, %v334_v33, %v335_v31  ;;  %v465_v37 = vrot.slane %v190_v29, 4  ;;  %v464_v47 = vrot.slane %v189_v32, 4 }
  0xc5   :  { %509 = vst [vmem:[%s784_s2 + $0x50] sm:$0xff] %v493_v18  ;;  %v368_v45 = vadd.f32 %v335_v31, %v279_v38  ;;  %v393_v48 = vsel %vm369_vm3, %v391_v44, %v392_v39 }
  0xc6   :  { %v367_v46 = vadd.f32 %v336_v12, %v278_v40  ;;  %v466_v51 = vsel %vm442_vm4, %v464_v47, %v465_v37 }
  0xc7   :  { %v425_v49 = vadd.f32 %v392_v39, %v368_v45 }
  0xc8   :  { %v424_v50 = vadd.f32 %v393_v48, %v367_v46 }
  0xc9   :  { %v498_v52 = vadd.f32 %v465_v37, %v425_v49 }
  0xca   :  { %v497_v53 = vadd.f32 %v466_v51, %v424_v50 }
  0xcb   :  { %514 = vst [vmem:[%s784_s2 + $0x78] sm:$0xf] %v498_v52 }
  0xcc   :  { %513 = vst [vmem:[%s784_s2 + $0x70] sm:$0xff] %v497_v53 }
  0xcd   :  { %519 = vsyncpa [#allocation3], 1 }
  0xce   :  { %520 = vsyncpa [#allocation5], 1 }

</bundles_post_ra>
